<compile_context>
chip_gen: v7x
topology: tpu7x:2x2x1
jax: 0.10.0
libtpu: 0.0.40
codegen_flags: <defaults>
</compile_context>

<pallas_src>
import jax
import jax.numpy as jnp
from jax.experimental import pallas as pl
from jax.experimental.pallas import tpu as pltpu


# ----------------------------------------------------------------------------
# forward(adj) -> (user_emb.weight, item_emb.weight)
# ----------------------------------------------------------------------------
def _copy_kernel(x_ref, o_ref):
    o_ref[...] = x_ref[...]


def _materialize_table_copy(x, row_tile=4096):
    """Tiled, lane-dense HBM->HBM copy of an embedding table.

    (N, 64) f32 tables are re-viewed as (N/2, 128) so loads/stores are full
    128-lane (no masked vst), then row-tiled.  row_tile=4096 gives 2 MiB
    blocks (in+out double-buffered = 8 MiB), near HBM roofline and well under
    the 32 MiB VMEM limit (safe on v7x's 64 MiB physical VMEM)."""
    n, d = x.shape
    packed = (d == 64 and n % 2 == 0)
    xv = x.reshape(n // 2, 128) if packed else x
    R, C = xv.shape

    if R <= row_tile:
        tr = R                              # single full block (always legal)
    else:
        tr = (row_tile // 8) * 8 or 8       # multiple of 8 sublanes

    grid = (pl.cdiv(R, tr),)
    out = pl.pallas_call(
        _copy_kernel,
        out_shape=jax.ShapeDtypeStruct((R, C), xv.dtype),
        grid=grid,
        in_specs=[pl.BlockSpec((tr, C), lambda i: (i, 0))],
        out_specs=pl.BlockSpec((tr, C), lambda i: (i, 0)),
        compiler_params=pltpu.CompilerParams(
            dimension_semantics=("parallel",),      # v7x: rows split across TCs
            vmem_limit_bytes=32 * 1024 * 1024,
        ),
    )(xv)
    return out.reshape(n, d) if packed else out


def lightgcn_forward(user_w, item_w, adj=None, materialize=False):
    """Matches LightGCN.forward: returns (user_emb.weight, item_emb.weight).

    `adj` is accepted but unused, exactly like the reference module (its
    forward() ignores adj and returns the raw weights)."""
    del adj
    if not materialize:
        return user_w, item_w
    return _materialize_table_copy(user_w), _materialize_table_copy(item_w)


# ----------------------------------------------------------------------------
# bpr_loss(u, i, j):
#   pos = sum(eu * vi, 1); neg = sum(eu * vj, 1)
#   loss = -mean(log(sigmoid(pos - neg)))  ==  mean(softplus(neg - pos))
# Tiled kernel: TB examples per grid step, lane-dense (TB, 2D) tiles,
# per-tile partial sums written to independent (8, 128) output blocks on a
# "parallel" axis; final mean done in the wrapper.
# ----------------------------------------------------------------------------
def _make_bpr_tile_kernel(batch_size, tile_rows, mask_tail):
    def kernel(a_ref, b_ref, o_ref):
        # a_ref: (TB, 2D) = [eu, -eu] ; b_ref: (TB, 2D) = [vi, vj]
        # sum over lanes: sum(eu*vi) - sum(eu*vj) = pos - neg = x   (full-width VPU + XLU)
        x = jnp.sum(a_ref[...] * b_ref[...], axis=1, keepdims=True)        # (TB, 1)
        # -log(sigmoid(x)) == softplus(-x), numerically stable form.
        per_ex = jnp.maximum(-x, 0.0) + jnp.log1p(jnp.exp(-jnp.abs(x)))    # (TB, 1)

        if mask_tail:
            t = pl.program_id(0)
            row = t * tile_rows + jax.lax.broadcasted_iota(
                jnp.int32, (tile_rows, 1), 0)
            per_ex = jnp.where(row < batch_size, per_ex, 0.0)

        partial = jnp.sum(per_ex)                                          # scalar
        # Each tile owns one (8, 128) output block (unmasked, layout-legal store);
        # the wrapper reads element [0] of each block.
        o_ref[...] = jnp.full((8, 128), partial, dtype=jnp.float32)
    return kernel


def lightgcn_bpr_loss(user_w, item_w, u_idx, i_idx, j_idx, tile_rows=512):
    B = int(u_idx.shape[0])
    D = int(user_w.shape[1])
    W = 2 * D

    # Gather + lane-dense packing in the wrapper (XLA fuses these cheaply).
    eu = jnp.take(user_w, u_idx.astype(jnp.int32), axis=0)   # (B, D)
    vi = jnp.take(item_w, i_idx.astype(jnp.int32), axis=0)
    vj = jnp.take(item_w, j_idx.astype(jnp.int32), axis=0)
    a = jnp.concatenate([eu, -eu], axis=1)                    # (B, 2D)
    bm = jnp.concatenate([vi, vj], axis=1)                    # (B, 2D)

    def _rup(v, m):
        return ((v + m - 1) // m) * m

    tb = min(int(tile_rows), _rup(B, 8))
    tb = max(8, (tb // 8) * 8)                                # multiple of 8 sublanes
    b_pad = _rup(B, tb)
    if b_pad != B:
        a = jnp.pad(a, ((0, b_pad - B), (0, 0)))
        bm = jnp.pad(bm, ((0, b_pad - B), (0, 0)))
    n_tiles = b_pad // tb

    kernel = _make_bpr_tile_kernel(B, tb, mask_tail=(b_pad != B))

    out = pl.pallas_call(
        kernel,
        out_shape=jax.ShapeDtypeStruct((n_tiles * 8, 128), jnp.float32),
        grid=(n_tiles,),
        in_specs=[
            pl.BlockSpec((tb, W), lambda t: (t, 0)),
            pl.BlockSpec((tb, W), lambda t: (t, 0)),
        ],
        out_specs=pl.BlockSpec((8, 128), lambda t: (t, 0)),   # one block per tile
        compiler_params=pltpu.CompilerParams(
            dimension_semantics=("parallel",),                # v7x: tiles across 2 TCs
            vmem_limit_bytes=32 * 1024 * 1024,
        ),
    )(a, bm)

    partials = out[::8, 0]                                    # (n_tiles,)
    return jnp.sum(partials) / jnp.float32(B)


# ----------------------------------------------------------------------------
if __name__ == "__main__":
    # Small shapes consistent with the module: U users, I items, emb_dim=64, K=3.
    U, I, EMB_DIM, K = 16, 24, 64, 3
    B = 8  # bpr batch

    key = jax.random.PRNGKey(0)
    k_user, k_item, k_u, k_i, k_j, k_u2, k_i2, k_j2 = jax.random.split(key, 8)

    # nn.Embedding default init: N(0, 1) — deterministic in-script init.
    user_w = jax.random.normal(k_user, (U, EMB_DIM), dtype=jnp.float32)
    item_w = jax.random.normal(k_item, (I, EMB_DIM), dtype=jnp.float32)

    # adj is unused by the reference forward; dummy to mirror the call signature.
    adj = jnp.zeros((U + I, U + I), dtype=jnp.float32)

    # ---- forward (default: alias, exactly like PyTorch returning .weight) ----
    ue_out, ie_out = lightgcn_forward(user_w, item_w, adj)
    assert ue_out.shape == (U, EMB_DIM) and ie_out.shape == (I, EMB_DIM)

    # ---- forward (materialized: tiled lane-dense Pallas copy) ----
    ue_cp, ie_cp = lightgcn_forward(user_w, item_w, adj, materialize=True)
    jax.block_until_ready((ue_cp, ie_cp))
    assert bool(jnp.allclose(ue_cp, user_w)) and bool(jnp.allclose(ie_cp, item_w))

    # Exercise a multi-block grid with a partial trailing block as well.
    ie_cp2 = _materialize_table_copy(item_w, row_tile=8)
    jax.block_until_ready(ie_cp2)
    assert bool(jnp.allclose(ie_cp2, item_w))

    def ref_bpr(uw, iw, u, i, j):
        eu, vi, vj = uw[u], iw[i], iw[j]
        return -jnp.mean(jnp.log(jax.nn.sigmoid((eu * vi).sum(1) - (eu * vj).sum(1))))

    # ---- bpr_loss hot path (single tile) ----
    u_idx = jax.random.randint(k_u, (B,), 0, U)
    i_idx = jax.random.randint(k_i, (B,), 0, I)
    j_idx = jax.random.randint(k_j, (B,), 0, I)
    loss = lightgcn_bpr_loss(user_w, item_w, u_idx, i_idx, j_idx)
    jax.block_until_ready(loss)
    ref = ref_bpr(user_w, item_w, u_idx, i_idx, j_idx)
    assert bool(jnp.allclose(loss, ref, atol=1e-4, rtol=1e-4)), (loss, ref)

    # ---- bpr_loss: multi-tile grid + masked tail (B2=20 with 8-row tiles) ----
    B2 = 20
    u2 = jax.random.randint(k_u2, (B2,), 0, U)
    i2 = jax.random.randint(k_i2, (B2,), 0, I)
    j2 = jax.random.randint(k_j2, (B2,), 0, I)
    loss2 = lightgcn_bpr_loss(user_w, item_w, u2, i2, j2, tile_rows=8)
    jax.block_until_ready(loss2)
    ref2 = ref_bpr(user_w, item_w, u2, i2, j2)
    assert bool(jnp.allclose(loss2, ref2, atol=1e-4, rtol=1e-4)), (loss2, ref2)

    print("KERNEL_OK")
</pallas_src>

<mosaic_0001>
module attributes {stable_mosaic.version = 11 : i64} {
  func.func @_copy_kernel(%arg0: i32, %arg1: memref<8x128xf32, #tpu.memory_space<vmem>>, %arg2: memref<8x128xf32, #tpu.memory_space<vmem>>) attributes {dimension_semantics = [#tpu.dimension_semantics<parallel>], iteration_bounds = array<i64: 1>, scalar_prefetch = 0 : i64, scratch_operands = 0 : i64, tpu.core_type = #tpu.core_type<tc>, window_params = [{transform_indices = @transform_0, window_bounds = array<i64: 8, 128>}, {transform_indices = @transform_1, window_bounds = array<i64: 8, 128>}]} {
    %c0 = arith.constant 0 : index
    %c0_0 = arith.constant 0 : index
    %0 = vector.load %arg1[%c0, %c0_0] : memref<8x128xf32, #tpu.memory_space<vmem>>, vector<8x128xf32>
    %c0_1 = arith.constant 0 : index
    %c0_2 = arith.constant 0 : index
    %1 = vector.load %arg2[%c0_1, %c0_2] : memref<8x128xf32, #tpu.memory_space<vmem>>, vector<8x128xf32>
    tpu.vector_store %arg2[%c0_1, %c0_2], %0 {strides = array<i32>} : memref<8x128xf32, #tpu.memory_space<vmem>>, vector<8x128xf32>,
    return
  }
  func.func @transform_0(%arg0: i32) -> (i32, i32) {
    %c0_i32 = arith.constant 0 : i32
    %c0_i32_0 = arith.constant 0 : i32
    return %arg0, %c0_i32 : i32, i32
  }
  func.func @transform_1(%arg0: i32) -> (i32, i32) {
    %c0_i32 = arith.constant 0 : i32
    %c0_i32_0 = arith.constant 0 : i32
    return %arg0, %c0_i32 : i32, i32
  }
}

</mosaic_0001>

<bundles_post_ra>
// kernel: tpu_custom_call.1
= control target key start
LH: loop header
LB: loop body
LE: loop exit
PB: predicated region body
PF: predicated region fallthrough
CT: control target
= control target key end

     0   :  { %6 = vsyncpa [#allocation3], 0  ;;  %s124_s0 = inlined_call_operand.hbm [shape: f32[8,128], index: 0, kind: input, shape index: {}]   ;;  %s125_s1 = inlined_call_operand.hbm [shape: f32[8,128], index: 1, kind: output, shape index: {}]  }
   0x1   :  { %7 = vsyncpa [#allocation4], 0  ;;  %s88_s6 = smov [#allocation2]   ;;  %s40_s10 = scalar_lea.hbm %s124_s0, 128 }
   0x2   :  { %s14_s7 = sshll.u32 %s88_s6, 4  ;;  %p41_p0 = scmp.ne.s32.totalorder %s124_s0, %s40_s10  ;;  %s15_s7 = int_to_ptr.vmem [resolvable:$true] %s14_s7 }
   0x3   :  { %p44_p1 = scmp.lt.u32.totalorder %s40_s10, %s124_s0 }
   0x5   :  { %p46_p2 = pnand %p44_p1, %p41_p0 }
   0x7   :  { %49 = shalt.err (!%p46_p2)
}
   0x8   :  { %s50_s15 = scalar_lea.vmem %s15_s7, 128  ;;  %p55_p4 = scmp.lt.s32.totalorder %s15_s7, %s15_s7 }
   0x9   :  { %p51_p3 = scmp.ne.s32.totalorder %s15_s7, %s50_s15  ;;  %p56_p5 = scmp.lt.s32.totalorder %s50_s15, %s50_s15 }
   0xb   :  { %p57_p6 = por %p56_p5, %p55_p4 }
   0xd   :  { %p58_p7 = pnand %p57_p6, %p51_p3 }
   0xf   :  { %61 = shalt.err (!%p58_p7)
}
  0x10   :  { %17 = dma.hbm_to_vmem [thread:$0]  %s124_s0, 128, %s15_s7, [#allocation3]  }
  0x11   :  { %84 = dma.done.wait [#allocation3], 128  }
  0x12   :  { %85 = vsyncadd [#allocation3], 4294967168  ;;  %s89_s18 = smov [#allocation5]   ;;  %v21_v0 = vld [vmem:[#allocation2] sm:$0xff] }
  0x13   :  { %s29_s19 = sshll.u32 %s89_s18, 4  ;;  %22 = vst [vmem:[#allocation5] sm:$0xff] %v21_v0  ;;  %s30_s19 = int_to_ptr.vmem [resolvable:$true] %s29_s19 }
  0x14   :  { %s62_s20 = scalar_lea.vmem %s30_s19, 128  ;;  %p67_p9 = scmp.lt.s32.totalorder %s30_s19, %s30_s19 }
  0x15   :  { %p63_p8 = scmp.ne.s32.totalorder %s30_s19, %s62_s20  ;;  %p68_p10 = scmp.lt.s32.totalorder %s62_s20, %s62_s20 }
  0x17   :  { %p69_p11 = por %p68_p10, %p67_p9 }
  0x19   :  { %p70_p12 = pnand %p69_p11, %p63_p8 }
  0x1b   :  { %73 = shalt.err (!%p70_p12)
}
  0x1c   :  { %s74_s23 = scalar_lea.hbm %s125_s1, 128 }
  0x1d   :  { %p75_p13 = scmp.ne.s32.totalorder %s125_s1, %s74_s23  ;;  %p78_p0 = scmp.lt.u32.totalorder %s74_s23, %s125_s1 }
  0x1f   :  { %p80_p1 = pnand %p78_p0, %p75_p13 }
  0x21   :  { %83 = shalt.err (!%p80_p1)
}
  0x22   :  { %32 = dma.vmem_to_hbm [thread:$0]  %s30_s19, 128, %s125_s1, [#allocation4]  }
  0x23   :  { %86 = dma.done.wait [#allocation4], 128  }
  0x24   :  { %87 = vsyncadd [#allocation4], 4294967168 }
  0x25   :  { %36 = vsyncpa [#allocation3], 1 }
  0x26   :  { %37 = vsyncpa [#allocation4], 1 }

</bundles_post_ra>
